<compile_context>
chip_gen: v6e
topology: v6e:2x2x1
jax: 0.10.0
libtpu: 0.0.40
codegen_flags: <defaults>
</compile_context>

<pallas_src>
import numpy as np
import jax
import jax.numpy as jnp
from jax import lax
from jax.experimental import pallas as pl
from jax.experimental.pallas import tpu as pltpu


# --------------------------------------------------------------------------
# glue: PyTorch-style (align_corners=False) source coords -> weight matrix
# --------------------------------------------------------------------------
def _interp_weight_matrix(in_size: int, out_size: int) -> np.ndarray:
    """Dense (out_size, in_size) bilinear weight matrix, PyTorch semantics."""
    scale = in_size / out_size
    o = np.arange(out_size, dtype=np.float64)
    src = (o + 0.5) * scale - 0.5
    src = np.maximum(src, 0.0)                       # PyTorch clamps negatives to 0
    i0 = np.minimum(np.floor(src).astype(np.int64), in_size - 1)
    i1 = np.minimum(i0 + 1, in_size - 1)
    l1 = src - i0
    l0 = 1.0 - l1
    w = np.zeros((out_size, in_size), dtype=np.float32)
    np.add.at(w, (np.arange(out_size), i0), l0.astype(np.float32))
    np.add.at(w, (np.arange(out_size), i1), l1.astype(np.float32))
    return w


def _pad_to(n: int, m: int) -> int:
    return ((int(n) + m - 1) // m) * m


# --------------------------------------------------------------------------
# Pallas kernel: per batch slice, out = A_h @ X @ A_w^T as two 2-D MXU matmuls
# (no broadcast / no batched dot_general; weights read at the use site).
# --------------------------------------------------------------------------
def _make_kernel(w_first: bool, compute_dtype, b_tile: int):
    compute_dtype = np.dtype(compute_dtype)

    def kernel(x_ref, wh_ref, wwT_ref, o_ref):
        # Static unrolled loop over the slices of this batch tile.  Each
        # iteration is load -> matmul -> matmul -> store, so live ranges are
        # short and nothing needs the whole tile resident in vregs.
        for b in range(b_tile):
            xb = x_ref[b]                                     # (H, W)
            if xb.dtype != compute_dtype:
                xb = xb.astype(compute_dtype)
            if w_first:
                tb = jnp.dot(xb, wwT_ref[...],
                             preferred_element_type=jnp.float32)   # (H, new_w)
                tb = tb.astype(compute_dtype)
                ob = jnp.dot(wh_ref[...], tb,
                             preferred_element_type=jnp.float32)   # (new_h, new_w)
            else:
                tb = jnp.dot(wh_ref[...], xb,
                             preferred_element_type=jnp.float32)   # (new_h, W)
                tb = tb.astype(compute_dtype)
                ob = jnp.dot(tb, wwT_ref[...],
                             preferred_element_type=jnp.float32)   # (new_h, new_w)
            o_ref[b] = ob.astype(o_ref.dtype)

    return kernel


def short_side_scale(x: jnp.ndarray, size: int) -> jnp.ndarray:
    """x: (C, T, H, W) -> (C, T, new_h, new_w), PyTorch ShortSideScale semantics."""
    c, t, h, w = x.shape
    # Exact output-size formula from the PyTorch module (spec), including its
    # int() truncation.
    if h < w:
        new_h = size
        new_w = int(w * (new_h / h))
    else:
        new_w = size
        new_h = int(h * (new_w / w))

    in_dt = np.dtype(x.dtype)
    if in_dt == np.dtype(jnp.bfloat16):
        compute_dtype = np.dtype(jnp.bfloat16)
    else:
        compute_dtype = np.dtype(np.float32)   # f32 operands, default MXU precision
    cbytes = compute_dtype.itemsize

    a_h = jnp.asarray(_interp_weight_matrix(h, new_h), dtype=compute_dtype)        # (new_h, H)
    a_w_t = jnp.asarray(np.ascontiguousarray(_interp_weight_matrix(w, new_w).T),
                        dtype=compute_dtype)                                       # (W, new_w)

    b = c * t
    x_flat = x.reshape(b, h, w)

    # Trace-time matmul-order choice (total MACs per batch element).
    macs_w_first = h * new_w * (w + new_h)
    macs_h_first = new_h * w * (h + new_w)
    w_first = macs_w_first <= macs_h_first
    mid_shape = (h, new_w) if w_first else (new_h, w)

    # ---- generation-aware VMEM budget, with (8,128)-tile-padded footprints ----
    try:
        vmem_cap = int(pltpu.get_tpu_info().vmem_capacity_bytes)
    except Exception:
        vmem_cap = 64 * 1024 * 1024            # conservative (v7x-sized) fallback
    vmem_budget = int(vmem_cap * 0.55)
    vmem_limit = int(vmem_cap * 0.85)

    sub_in = max(1, 8 * 4 // in_dt.itemsize)   # sublane multiple: 8 f32, 16 bf16
    sub_c = max(1, 8 * 4 // cbytes)

    in_slice = _pad_to(h, sub_in) * _pad_to(w, 128) * in_dt.itemsize
    out_slice = _pad_to(new_h, sub_in) * _pad_to(new_w, 128) * in_dt.itemsize
    per_b = 2 * (in_slice + out_slice)         # double-buffered pipeline tiles

    weights = (_pad_to(new_h, sub_c) * _pad_to(h, 128)
               + _pad_to(w, sub_c) * _pad_to(new_w, 128)) * cbytes
    interm = (_pad_to(mid_shape[0], 8) * _pad_to(mid_shape[1], 128)
              + _pad_to(new_h, 8) * _pad_to(new_w, 128)) * 4   # per-slice f32 work set
    fixed = 2 * weights + interm               # weight blocks are double-buffered

    b_tile = int(max(1, min(b, (vmem_budget - fixed) // max(per_b, 1))))
    # keep >= 4 grid steps when possible (>= 2 pipelined steps per v7x core)
    if b >= 4:
        b_tile = min(b_tile, max(1, b // 4))
    elif b >= 2:
        b_tile = min(b_tile, max(1, b // 2))
    b_tile = min(b_tile, 64)                   # bound the unrolled per-slice loop
    # prefer a B_TILE that divides B (no ragged last tile) if it's cheap
    d = b_tile
    while d > 1 and b % d != 0:
        d -= 1
    if d * 2 >= b_tile:
        b_tile = d
    grid = (pl.cdiv(b, b_tile),)

    kernel = _make_kernel(w_first, compute_dtype, b_tile)

    flops = 2 * b * min(macs_w_first, macs_h_first)
    bytes_accessed = (b * (h * w + new_h * new_w) * in_dt.itemsize
                      + (new_h * h + w * new_w) * cbytes)

    out_flat = pl.pallas_call(
        kernel,
        out_shape=jax.ShapeDtypeStruct((b, new_h, new_w), x.dtype),
        grid_spec=pltpu.PrefetchScalarGridSpec(
            num_scalar_prefetch=0,
            grid=grid,
            in_specs=[
                pl.BlockSpec((b_tile, h, w), lambda i: (i, 0, 0)),
                pl.BlockSpec((new_h, h), lambda i: (0, 0)),     # constant block -> no re-DMA
                pl.BlockSpec((w, new_w), lambda i: (0, 0)),
            ],
            out_specs=pl.BlockSpec((b_tile, new_h, new_w), lambda i: (i, 0, 0)),
        ),
        compiler_params=pltpu.CompilerParams(
            dimension_semantics=("parallel",),
            vmem_limit_bytes=vmem_limit,
        ),
        cost_estimate=pl.CostEstimate(flops=flops, transcendentals=0,
                                      bytes_accessed=bytes_accessed),
    )(x_flat, a_h, a_w_t)

    return out_flat.reshape(c, t, new_h, new_w)


# --------------------------------------------------------------------------
# independent gather-based reference of torch.nn.functional.interpolate
# (mode='bilinear', align_corners=False) for a correctness check
# --------------------------------------------------------------------------
def _torch_bilinear_ref(x: np.ndarray, new_h: int, new_w: int) -> np.ndarray:
    _, _, h, w = x.shape

    def coords(out_size, in_size):
        scale = in_size / out_size
        s = np.maximum((np.arange(out_size) + 0.5) * scale - 0.5, 0.0)
        i0 = np.minimum(np.floor(s).astype(np.int64), in_size - 1)
        i1 = np.minimum(i0 + 1, in_size - 1)
        l1 = (s - i0).astype(np.float32)
        return i0, i1, 1.0 - l1, l1

    h0, h1, lh0, lh1 = coords(new_h, h)
    w0, w1, lw0, lw1 = coords(new_w, w)
    out = (x[..., h0[:, None], w0[None, :]] * (lh0[:, None] * lw0[None, :])
           + x[..., h0[:, None], w1[None, :]] * (lh0[:, None] * lw1[None, :])
           + x[..., h1[:, None], w0[None, :]] * (lh1[:, None] * lw0[None, :])
           + x[..., h1[:, None], w1[None, :]] * (lh1[:, None] * lw1[None, :]))
    return out.astype(x.dtype)


if __name__ == "__main__":
    key = jax.random.PRNGKey(0)

    def run_case(c, t, h, w, size, k):
        x = jax.random.normal(k, (c, t, h, w), dtype=jnp.float32)
        out = jax.block_until_ready(short_side_scale(x, size))
        if h < w:
            eh, ew = size, int(w * (size / h))
        else:
            ew, eh = size, int(h * (size / w))
        assert out.shape == (c, t, eh, ew), out.shape
        assert out.dtype == x.dtype
        ref = _torch_bilinear_ref(np.asarray(x), eh, ew)
        # Default MXU precision rounds operands to bf16 (single pass, f32
        # accumulate); 2e-2 tolerates that while still catching indexing /
        # weight-matrix bugs (those give O(1) errors).
        np.testing.assert_allclose(np.asarray(out), ref, rtol=2e-2, atol=2e-2)

    k1, k2 = jax.random.split(key)
    run_case(4, 8, 12, 16, 8, k1)   # H < W branch (H-resize-first matmul order)
    run_case(2, 4, 16, 12, 8, k2)   # H >= W branch (W-resize-first matmul order)

    print("KERNEL_OK")
</pallas_src>

<mosaic_0001>
module attributes {stable_mosaic.version = 11 : i64} {
  func.func @kernel(%arg0: i32, %arg1: memref<8x12x16xf32, #tpu.memory_space<vmem>>, %arg2: memref<8x12xf32, #tpu.memory_space<vmem>>, %arg3: memref<16x10xf32, #tpu.memory_space<vmem>>, %arg4: memref<8x8x10xf32, #tpu.memory_space<vmem>>) attributes {dimension_semantics = [#tpu.dimension_semantics<parallel>], iteration_bounds = array<i64: 4>, scalar_prefetch = 0 : i64, scratch_operands = 0 : i64, tpu.core_type = #tpu.core_type<tc>, window_params = [{transform_indices = @transform_0, window_bounds = array<i64: 8, 12, 16>}, {pipeline_mode = #tpu.pipeline_mode<synchronous>, transform_indices = @transform_1, window_bounds = array<i64: 8, 12>}, {pipeline_mode = #tpu.pipeline_mode<synchronous>, transform_indices = @transform_2, window_bounds = array<i64: 16, 10>}, {transform_indices = @transform_3, window_bounds = array<i64: 8, 8, 10>}]} {
    %c0 = arith.constant 0 : index
    %c0_0 = arith.constant 0 : index
    %c0_1 = arith.constant 0 : index
    %0 = vector.load %arg1[%c0, %c0_0, %c0_1] : memref<8x12x16xf32, #tpu.memory_space<vmem>>, vector<1x12x16xf32>
    %1 = vector.shape_cast %0 : vector<1x12x16xf32> to vector<12x16xf32>
    %c0_2 = arith.constant 0 : index
    %c0_3 = arith.constant 0 : index
    %2 = vector.load %arg2[%c0_2, %c0_3] : memref<8x12xf32, #tpu.memory_space<vmem>>, vector<8x12xf32>
    %cst = arith.constant dense<0.000000e+00> : vector<8x16xf32>
    %3 = tpu.matmul %2, %1, %cst {dimension_numbers = #tpu.dot_dimension_numbers<[1], [0], [0], [1], [0, 0, 1, 1], [], []>} : vector<8x12xf32>, vector<12x16xf32>, vector<8x16xf32> -> vector<8x16xf32>
    %c0_4 = arith.constant 0 : index
    %c0_5 = arith.constant 0 : index
    %4 = vector.load %arg3[%c0_4, %c0_5] : memref<16x10xf32, #tpu.memory_space<vmem>>, vector<16x10xf32>
    %cst_6 = arith.constant dense<0.000000e+00> : vector<8x10xf32>
    %5 = tpu.matmul %3, %4, %cst_6 {dimension_numbers = #tpu.dot_dimension_numbers<[1], [0], [0], [1], [0, 0, 1, 1], [], []>} : vector<8x16xf32>, vector<16x10xf32>, vector<8x10xf32> -> vector<8x10xf32>
    %c0_7 = arith.constant 0 : index
    %c0_8 = arith.constant 0 : index
    %c0_9 = arith.constant 0 : index
    %6 = vector.load %arg4[%c0_7, %c0_8, %c0_9] : memref<8x8x10xf32, #tpu.memory_space<vmem>>, vector<1x8x10xf32>
    %7 = vector.shape_cast %6 : vector<1x8x10xf32> to vector<8x10xf32>
    %8 = vector.shape_cast %5 : vector<8x10xf32> to vector<1x8x10xf32>
    tpu.vector_store %arg4[%c0_7, %c0_8, %c0_9], %8 {strides = array<i32>} : memref<8x8x10xf32, #tpu.memory_space<vmem>>, vector<1x8x10xf32>,
    %c1 = arith.constant 1 : index
    %c0_10 = arith.constant 0 : index
    %c0_11 = arith.constant 0 : index
    %9 = vector.load %arg1[%c1, %c0_10, %c0_11] : memref<8x12x16xf32, #tpu.memory_space<vmem>>, vector<1x12x16xf32>
    %10 = vector.shape_cast %9 : vector<1x12x16xf32> to vector<12x16xf32>
    %c0_12 = arith.constant 0 : index
    %c0_13 = arith.constant 0 : index
    %11 = vector.load %arg2[%c0_12, %c0_13] : memref<8x12xf32, #tpu.memory_space<vmem>>, vector<8x12xf32>
    %cst_14 = arith.constant dense<0.000000e+00> : vector<8x16xf32>
    %12 = tpu.matmul %11, %10, %cst_14 {dimension_numbers = #tpu.dot_dimension_numbers<[1], [0], [0], [1], [0, 0, 1, 1], [], []>} : vector<8x12xf32>, vector<12x16xf32>, vector<8x16xf32> -> vector<8x16xf32>
    %c0_15 = arith.constant 0 : index
    %c0_16 = arith.constant 0 : index
    %13 = vector.load %arg3[%c0_15, %c0_16] : memref<16x10xf32, #tpu.memory_space<vmem>>, vector<16x10xf32>
    %cst_17 = arith.constant dense<0.000000e+00> : vector<8x10xf32>
    %14 = tpu.matmul %12, %13, %cst_17 {dimension_numbers = #tpu.dot_dimension_numbers<[1], [0], [0], [1], [0, 0, 1, 1], [], []>} : vector<8x16xf32>, vector<16x10xf32>, vector<8x10xf32> -> vector<8x10xf32>
    %c1_18 = arith.constant 1 : index
    %c0_19 = arith.constant 0 : index
    %c0_20 = arith.constant 0 : index
    %15 = vector.load %arg4[%c1_18, %c0_19, %c0_20] : memref<8x8x10xf32, #tpu.memory_space<vmem>>, vector<1x8x10xf32>
    %16 = vector.shape_cast %15 : vector<1x8x10xf32> to vector<8x10xf32>
    %17 = vector.shape_cast %14 : vector<8x10xf32> to vector<1x8x10xf32>
    tpu.vector_store %arg4[%c1_18, %c0_19, %c0_20], %17 {strides = array<i32>} : memref<8x8x10xf32, #tpu.memory_space<vmem>>, vector<1x8x10xf32>,
    %c2 = arith.constant 2 : index
    %c0_21 = arith.constant 0 : index
    %c0_22 = arith.constant 0 : index
    %18 = vector.load %arg1[%c2, %c0_21, %c0_22] : memref<8x12x16xf32, #tpu.memory_space<vmem>>, vector<1x12x16xf32>
    %19 = vector.shape_cast %18 : vector<1x12x16xf32> to vector<12x16xf32>
    %c0_23 = arith.constant 0 : index
    %c0_24 = arith.constant 0 : index
    %20 = vector.load %arg2[%c0_23, %c0_24] : memref<8x12xf32, #tpu.memory_space<vmem>>, vector<8x12xf32>
    %cst_25 = arith.constant dense<0.000000e+00> : vector<8x16xf32>
    %21 = tpu.matmul %20, %19, %cst_25 {dimension_numbers = #tpu.dot_dimension_numbers<[1], [0], [0], [1], [0, 0, 1, 1], [], []>} : vector<8x12xf32>, vector<12x16xf32>, vector<8x16xf32> -> vector<8x16xf32>
    %c0_26 = arith.constant 0 : index
    %c0_27 = arith.constant 0 : index
    %22 = vector.load %arg3[%c0_26, %c0_27] : memref<16x10xf32, #tpu.memory_space<vmem>>, vector<16x10xf32>
    %cst_28 = arith.constant dense<0.000000e+00> : vector<8x10xf32>
    %23 = tpu.matmul %21, %22, %cst_28 {dimension_numbers = #tpu.dot_dimension_numbers<[1], [0], [0], [1], [0, 0, 1, 1], [], []>} : vector<8x16xf32>, vector<16x10xf32>, vector<8x10xf32> -> vector<8x10xf32>
    %c2_29 = arith.constant 2 : index
    %c0_30 = arith.constant 0 : index
    %c0_31 = arith.constant 0 : index
    %24 = vector.load %arg4[%c2_29, %c0_30, %c0_31] : memref<8x8x10xf32, #tpu.memory_space<vmem>>, vector<1x8x10xf32>
    %25 = vector.shape_cast %24 : vector<1x8x10xf32> to vector<8x10xf32>
    %26 = vector.shape_cast %23 : vector<8x10xf32> to vector<1x8x10xf32>
    tpu.vector_store %arg4[%c2_29, %c0_30, %c0_31], %26 {strides = array<i32>} : memref<8x8x10xf32, #tpu.memory_space<vmem>>, vector<1x8x10xf32>,
    %c3 = arith.constant 3 : index
    %c0_32 = arith.constant 0 : index
    %c0_33 = arith.constant 0 : index
    %27 = vector.load %arg1[%c3, %c0_32, %c0_33] : memref<8x12x16xf32, #tpu.memory_space<vmem>>, vector<1x12x16xf32>
    %28 = vector.shape_cast %27 : vector<1x12x16xf32> to vector<12x16xf32>
    %c0_34 = arith.constant 0 : index
    %c0_35 = arith.constant 0 : index
    %29 = vector.load %arg2[%c0_34, %c0_35] : memref<8x12xf32, #tpu.memory_space<vmem>>, vector<8x12xf32>
    %cst_36 = arith.constant dense<0.000000e+00> : vector<8x16xf32>
    %30 = tpu.matmul %29, %28, %cst_36 {dimension_numbers = #tpu.dot_dimension_numbers<[1], [0], [0], [1], [0, 0, 1, 1], [], []>} : vector<8x12xf32>, vector<12x16xf32>, vector<8x16xf32> -> vector<8x16xf32>
    %c0_37 = arith.constant 0 : index
    %c0_38 = arith.constant 0 : index
    %31 = vector.load %arg3[%c0_37, %c0_38] : memref<16x10xf32, #tpu.memory_space<vmem>>, vector<16x10xf32>
    %cst_39 = arith.constant dense<0.000000e+00> : vector<8x10xf32>
    %32 = tpu.matmul %30, %31, %cst_39 {dimension_numbers = #tpu.dot_dimension_numbers<[1], [0], [0], [1], [0, 0, 1, 1], [], []>} : vector<8x16xf32>, vector<16x10xf32>, vector<8x10xf32> -> vector<8x10xf32>
    %c3_40 = arith.constant 3 : index
    %c0_41 = arith.constant 0 : index
    %c0_42 = arith.constant 0 : index
    %33 = vector.load %arg4[%c3_40, %c0_41, %c0_42] : memref<8x8x10xf32, #tpu.memory_space<vmem>>, vector<1x8x10xf32>
    %34 = vector.shape_cast %33 : vector<1x8x10xf32> to vector<8x10xf32>
    %35 = vector.shape_cast %32 : vector<8x10xf32> to vector<1x8x10xf32>
    tpu.vector_store %arg4[%c3_40, %c0_41, %c0_42], %35 {strides = array<i32>} : memref<8x8x10xf32, #tpu.memory_space<vmem>>, vector<1x8x10xf32>,
    %c4 = arith.constant 4 : index
    %c0_43 = arith.constant 0 : index
    %c0_44 = arith.constant 0 : index
    %36 = vector.load %arg1[%c4, %c0_43, %c0_44] : memref<8x12x16xf32, #tpu.memory_space<vmem>>, vector<1x12x16xf32>
    %37 = vector.shape_cast %36 : vector<1x12x16xf32> to vector<12x16xf32>
    %c0_45 = arith.constant 0 : index
    %c0_46 = arith.constant 0 : index
    %38 = vector.load %arg2[%c0_45, %c0_46] : memref<8x12xf32, #tpu.memory_space<vmem>>, vector<8x12xf32>
    %cst_47 = arith.constant dense<0.000000e+00> : vector<8x16xf32>
    %39 = tpu.matmul %38, %37, %cst_47 {dimension_numbers = #tpu.dot_dimension_numbers<[1], [0], [0], [1], [0, 0, 1, 1], [], []>} : vector<8x12xf32>, vector<12x16xf32>, vector<8x16xf32> -> vector<8x16xf32>
    %c0_48 = arith.constant 0 : index
    %c0_49 = arith.constant 0 : index
    %40 = vector.load %arg3[%c0_48, %c0_49] : memref<16x10xf32, #tpu.memory_space<vmem>>, vector<16x10xf32>
    %cst_50 = arith.constant dense<0.000000e+00> : vector<8x10xf32>
    %41 = tpu.matmul %39, %40, %cst_50 {dimension_numbers = #tpu.dot_dimension_numbers<[1], [0], [0], [1], [0, 0, 1, 1], [], []>} : vector<8x16xf32>, vector<16x10xf32>, vector<8x10xf32> -> vector<8x10xf32>
    %c4_51 = arith.constant 4 : index
    %c0_52 = arith.constant 0 : index
    %c0_53 = arith.constant 0 : index
    %42 = vector.load %arg4[%c4_51, %c0_52, %c0_53] : memref<8x8x10xf32, #tpu.memory_space<vmem>>, vector<1x8x10xf32>
    %43 = vector.shape_cast %42 : vector<1x8x10xf32> to vector<8x10xf32>
    %44 = vector.shape_cast %41 : vector<8x10xf32> to vector<1x8x10xf32>
    tpu.vector_store %arg4[%c4_51, %c0_52, %c0_53], %44 {strides = array<i32>} : memref<8x8x10xf32, #tpu.memory_space<vmem>>, vector<1x8x10xf32>,
    %c5 = arith.constant 5 : index
    %c0_54 = arith.constant 0 : index
    %c0_55 = arith.constant 0 : index
    %45 = vector.load %arg1[%c5, %c0_54, %c0_55] : memref<8x12x16xf32, #tpu.memory_space<vmem>>, vector<1x12x16xf32>
    %46 = vector.shape_cast %45 : vector<1x12x16xf32> to vector<12x16xf32>
    %c0_56 = arith.constant 0 : index
    %c0_57 = arith.constant 0 : index
    %47 = vector.load %arg2[%c0_56, %c0_57] : memref<8x12xf32, #tpu.memory_space<vmem>>, vector<8x12xf32>
    %cst_58 = arith.constant dense<0.000000e+00> : vector<8x16xf32>
    %48 = tpu.matmul %47, %46, %cst_58 {dimension_numbers = #tpu.dot_dimension_numbers<[1], [0], [0], [1], [0, 0, 1, 1], [], []>} : vector<8x12xf32>, vector<12x16xf32>, vector<8x16xf32> -> vector<8x16xf32>
    %c0_59 = arith.constant 0 : index
    %c0_60 = arith.constant 0 : index
    %49 = vector.load %arg3[%c0_59, %c0_60] : memref<16x10xf32, #tpu.memory_space<vmem>>, vector<16x10xf32>
    %cst_61 = arith.constant dense<0.000000e+00> : vector<8x10xf32>
    %50 = tpu.matmul %48, %49, %cst_61 {dimension_numbers = #tpu.dot_dimension_numbers<[1], [0], [0], [1], [0, 0, 1, 1], [], []>} : vector<8x16xf32>, vector<16x10xf32>, vector<8x10xf32> -> vector<8x10xf32>
    %c5_62 = arith.constant 5 : index
    %c0_63 = arith.constant 0 : index
    %c0_64 = arith.constant 0 : index
    %51 = vector.load %arg4[%c5_62, %c0_63, %c0_64] : memref<8x8x10xf32, #tpu.memory_space<vmem>>, vector<1x8x10xf32>
    %52 = vector.shape_cast %51 : vector<1x8x10xf32> to vector<8x10xf32>
    %53 = vector.shape_cast %50 : vector<8x10xf32> to vector<1x8x10xf32>
    tpu.vector_store %arg4[%c5_62, %c0_63, %c0_64], %53 {strides = array<i32>} : memref<8x8x10xf32, #tpu.memory_space<vmem>>, vector<1x8x10xf32>,
    %c6 = arith.constant 6 : index
    %c0_65 = arith.constant 0 : index
    %c0_66 = arith.constant 0 : index
    %54 = vector.load %arg1[%c6, %c0_65, %c0_66] : memref<8x12x16xf32, #tpu.memory_space<vmem>>, vector<1x12x16xf32>
    %55 = vector.shape_cast %54 : vector<1x12x16xf32> to vector<12x16xf32>
    %c0_67 = arith.constant 0 : index
    %c0_68 = arith.constant 0 : index
    %56 = vector.load %arg2[%c0_67, %c0_68] : memref<8x12xf32, #tpu.memory_space<vmem>>, vector<8x12xf32>
    %cst_69 = arith.constant dense<0.000000e+00> : vector<8x16xf32>
    %57 = tpu.matmul %56, %55, %cst_69 {dimension_numbers = #tpu.dot_dimension_numbers<[1], [0], [0], [1], [0, 0, 1, 1], [], []>} : vector<8x12xf32>, vector<12x16xf32>, vector<8x16xf32> -> vector<8x16xf32>
    %c0_70 = arith.constant 0 : index
    %c0_71 = arith.constant 0 : index
    %58 = vector.load %arg3[%c0_70, %c0_71] : memref<16x10xf32, #tpu.memory_space<vmem>>, vector<16x10xf32>
    %cst_72 = arith.constant dense<0.000000e+00> : vector<8x10xf32>
    %59 = tpu.matmul %57, %58, %cst_72 {dimension_numbers = #tpu.dot_dimension_numbers<[1], [0], [0], [1], [0, 0, 1, 1], [], []>} : vector<8x16xf32>, vector<16x10xf32>, vector<8x10xf32> -> vector<8x10xf32>
    %c6_73 = arith.constant 6 : index
    %c0_74 = arith.constant 0 : index
    %c0_75 = arith.constant 0 : index
    %60 = vector.load %arg4[%c6_73, %c0_74, %c0_75] : memref<8x8x10xf32, #tpu.memory_space<vmem>>, vector<1x8x10xf32>
    %61 = vector.shape_cast %60 : vector<1x8x10xf32> to vector<8x10xf32>
    %62 = vector.shape_cast %59 : vector<8x10xf32> to vector<1x8x10xf32>
    tpu.vector_store %arg4[%c6_73, %c0_74, %c0_75], %62 {strides = array<i32>} : memref<8x8x10xf32, #tpu.memory_space<vmem>>, vector<1x8x10xf32>,
    %c7 = arith.constant 7 : index
    %c0_76 = arith.constant 0 : index
    %c0_77 = arith.constant 0 : index
    %63 = vector.load %arg1[%c7, %c0_76, %c0_77] : memref<8x12x16xf32, #tpu.memory_space<vmem>>, vector<1x12x16xf32>
    %64 = vector.shape_cast %63 : vector<1x12x16xf32> to vector<12x16xf32>
    %c0_78 = arith.constant 0 : index
    %c0_79 = arith.constant 0 : index
    %65 = vector.load %arg2[%c0_78, %c0_79] : memref<8x12xf32, #tpu.memory_space<vmem>>, vector<8x12xf32>
    %cst_80 = arith.constant dense<0.000000e+00> : vector<8x16xf32>
    %66 = tpu.matmul %65, %64, %cst_80 {dimension_numbers = #tpu.dot_dimension_numbers<[1], [0], [0], [1], [0, 0, 1, 1], [], []>} : vector<8x12xf32>, vector<12x16xf32>, vector<8x16xf32> -> vector<8x16xf32>
    %c0_81 = arith.constant 0 : index
    %c0_82 = arith.constant 0 : index
    %67 = vector.load %arg3[%c0_81, %c0_82] : memref<16x10xf32, #tpu.memory_space<vmem>>, vector<16x10xf32>
    %cst_83 = arith.constant dense<0.000000e+00> : vector<8x10xf32>
    %68 = tpu.matmul %66, %67, %cst_83 {dimension_numbers = #tpu.dot_dimension_numbers<[1], [0], [0], [1], [0, 0, 1, 1], [], []>} : vector<8x16xf32>, vector<16x10xf32>, vector<8x10xf32> -> vector<8x10xf32>
    %c7_84 = arith.constant 7 : index
    %c0_85 = arith.constant 0 : index
    %c0_86 = arith.constant 0 : index
    %69 = vector.load %arg4[%c7_84, %c0_85, %c0_86] : memref<8x8x10xf32, #tpu.memory_space<vmem>>, vector<1x8x10xf32>
    %70 = vector.shape_cast %69 : vector<1x8x10xf32> to vector<8x10xf32>
    %71 = vector.shape_cast %68 : vector<8x10xf32> to vector<1x8x10xf32>
    tpu.vector_store %arg4[%c7_84, %c0_85, %c0_86], %71 {strides = array<i32>} : memref<8x8x10xf32, #tpu.memory_space<vmem>>, vector<1x8x10xf32>,
    return
  }
  func.func @transform_0(%arg0: i32) -> (i32, i32, i32) {
    %c0_i32 = arith.constant 0 : i32
    %c0_i32_0 = arith.constant 0 : i32
    %c0_i32_1 = arith.constant 0 : i32
    return %arg0, %c0_i32, %c0_i32_0 : i32, i32, i32
  }
  func.func @transform_1(%arg0: i32) -> (i32, i32) {
    %c0_i32 = arith.constant 0 : i32
    %c0_i32_0 = arith.constant 0 : i32
    %c0_i32_1 = arith.constant 0 : i32
    return %c0_i32, %c0_i32_0 : i32, i32
  }
  func.func @transform_2(%arg0: i32) -> (i32, i32) {
    %c0_i32 = arith.constant 0 : i32
    %c0_i32_0 = arith.constant 0 : i32
    %c0_i32_1 = arith.constant 0 : i32
    return %c0_i32, %c0_i32_0 : i32, i32
  }
  func.func @transform_3(%arg0: i32) -> (i32, i32, i32) {
    %c0_i32 = arith.constant 0 : i32
    %c0_i32_0 = arith.constant 0 : i32
    %c0_i32_1 = arith.constant 0 : i32
    return %arg0, %c0_i32, %c0_i32_0 : i32, i32, i32
  }
}

</mosaic_0001>

<bundles_post_ra>
// kernel: tpu_custom_call.1
= control target key start
LH: loop header
LB: loop body
LE: loop exit
PB: predicated region body
PF: predicated region fallthrough
CT: control target
= control target key end

     0   :  { %s1749_s12 = smov 0   ;;  %s1903_s0 = inlined_call_operand.vmem [shape: f32[32,12,16], index: 0, kind: input, shape index: {}]   ;;  %s1904_s1 = inlined_call_operand.vmem [shape: f32[8,12], index: 1, kind: input, shape index: {}]   ;;  %s1905_s2 = inlined_call_operand.vmem [shape: f32[16,10], index: 2, kind: input, shape index: {}]   ;;  %s1906_s3 = inlined_call_operand.vmem [shape: f32[32,8,10], index: 3, kind: output, shape index: {}]  }
   0x1 LB: > { %s1491_s13 = sadd.s32 4294967295, %s1725_s12   ;;  %p1495_p0 = scmp.ge.s32.totalorder %s1725_s12, 1  ;;  %s1725_s12 = sphi %s1749_s12, %s13_s12  }
   0x2   : > { %p139_p1 = scmp.lt.s32.totalorder %s1725_s12, 5 }
   0x4   : > { %p140_p2 = pnand %p1495_p0, %p139_p1 }
   0x5   : > { %s1496_s14 = sshll.u32 (!%p140_p2), %s1491_s13, 3 }
   0x6   : > { %143 = sbr.rel (%p140_p2) target bundleno = 434 (0x1b2), region = 32  ;;  %p165_p3 = scmp.lt.s32.totalorder (!%p140_p2), %s1496_s14, 31 }
   0xb   : > { %v1727_v0 = vmov 0.0   ;;  %vm1728_vm0 = vmmov 0   ;;  %v1763_v1 = vld [vmem:[%s1905_s2 + $0x8] sm:$0xff]  ;;  %s1908_s14 = smov (!%p165_p3, %s1496_s14), 31  ;;  %vm184_vm1 = vcmask 1043456   ;;  %v179_v4 = vld [vmem:[%s1904_s1] sm:$0xff] }
   0xc   : > { %1597 = vmatprep.subr.mxu0 %v1727_v0  ;;  %1601 = vmatprep.mubr.msk.f32.mxu0 %vm1728_vm0, %v1727_v0  ;;  %s1548_s17 = sshll.u32 %s1908_s14, 4  ;;  %vm180_vm2 = vcmask 97280   ;;  %v258_v19 = vld [vmem:[%s1905_s2] sm:$0xff]  ;;  %vm260_vm3 = vcmask 130048   ;;  %s1500_s25 = sshll.u32 %s1908_s14, 3  ;;  %vm334_vm4 = vcmask 80896  }
   0xd   : > { %1604 = vmatprep.subr.mxu1 %v1727_v0  ;;  %1608 = vmatprep.mubr.msk.f32.mxu1 %vm1728_vm0, %v1727_v0  ;;  %s1776_s20 = scalar_lea.vmem %s1903_s0, %s1548_s17  ;;  %s175_s28 = scalar_lea.vmem %s1906_s3, %s1500_s25 }
   0xe   : > { %1605 = vmatpush3.msra.mxu1 %v1763_v1  ;;  %v178_v2 = vld [vmem:[%s1776_s20 + $0x8] sm:$0xf]  ;;  %v177_v3 = vld [vmem:[%s1776_s20] sm:$0xff]  ;;  %v1505_v5 = vld [vmem:[%s1776_s20 + $0x18] sm:$0xf] }
   0xf   : > { %1606 = vmatprep.subr.mxu1 %v1727_v0  ;;  %1598 = vmatpush3.msk.msra.mxu0 %vm184_vm1, %v178_v2  ;;  %v1504_v6 = vld [vmem:[%s1776_s20 + $0x10] sm:$0xff]  ;;  %v1511_v7 = vld [vmem:[%s1776_s20 + $0x28] sm:$0xf]  ;;  %v1510_v8 = vld [vmem:[%s1776_s20 + $0x20] sm:$0xff] }
  0x10   : > { %1599 = vmatprep.subr.mxu0 %v1727_v0  ;;  %v1517_v9 = vld [vmem:[%s1776_s20 + $0x38] sm:$0xf]  ;;  %v1516_v10 = vld [vmem:[%s1776_s20 + $0x30] sm:$0xff]  ;;  %v1523_v11 = vld [vmem:[%s1776_s20 + $0x48] sm:$0xf]  ;;  %1607 = vmatpush3.msra.mxu1 %v258_v19 }
  0x11   : > { %1600 = vmatpush3.msra.mxu0 %v177_v3  ;;  %v1522_v12 = vld [vmem:[%s1776_s20 + $0x40] sm:$0xff]  ;;  %v1529_v13 = vld [vmem:[%s1776_s20 + $0x58] sm:$0xf]  ;;  %v1528_v14 = vld [vmem:[%s1776_s20 + $0x50] sm:$0xff]  ;;  %1618 = vmatprep.subr.mxu1 %v1727_v0 }
  0x12   : > { %1602 = vmatmul.mubr.msk.f32.vlgmr.msra.gmra.mxu0 %vm180_vm2, %v179_v4  ;;  %1611 = vmatprep.subr.mxu0 %v1727_v0  ;;  %v1535_v15 = vld [vmem:[%s1776_s20 + $0x68] sm:$0xf]  ;;  %v1534_v16 = vld [vmem:[%s1776_s20 + $0x60] sm:$0xff]  ;;  %v1541_v17 = vld [vmem:[%s1776_s20 + $0x78] sm:$0xf] }
  0x13   : > { %1612 = vmatpush3.msk.msra.mxu0 %vm184_vm1, %v1505_v5  ;;  %1615 = vmatprep.mubr.msk.f32.mxu0 %vm1728_vm0, %v1727_v0  ;;  %v1540_v18 = vld [vmem:[%s1776_s20 + $0x70] sm:$0xff] }
  0x14   : > { %1613 = vmatprep.subr.mxu0 %v1727_v0 }
  0x15   : > { %1614 = vmatpush3.msra.mxu0 %v1504_v6 }
  0x16   : > { %1616 = vmatmul.mubr.msk.f32.vlgmr.msra.gmra.mxu0 %vm180_vm2, %v179_v4  ;;  %1625 = vmatprep.subr.mxu0 %v1727_v0 }
  0x17   : > { %1626 = vmatpush3.msk.msra.mxu0 %vm184_vm1, %v1511_v7  ;;  %1629 = vmatprep.mubr.msk.f32.mxu0 %vm1728_vm0, %v1727_v0 }
  0x18   : > { %1627 = vmatprep.subr.mxu0 %v1727_v0 }
  0x19   : > { %1628 = vmatpush3.msra.mxu0 %v1510_v8 }
  0x1a   : > { %1630 = vmatmul.mubr.msk.f32.vlgmr.msra.gmra.mxu0 %vm180_vm2, %v179_v4  ;;  %1639 = vmatprep.subr.mxu0 %v1727_v0 }
  0x1b   : > { %1640 = vmatpush3.msk.msra.mxu0 %vm184_vm1, %v1517_v9  ;;  %1643 = vmatprep.mubr.msk.f32.mxu0 %vm1728_vm0, %v1727_v0 }
  0x1c   : > { %1641 = vmatprep.subr.mxu0 %v1727_v0 }
  0x1d   : > { %1642 = vmatpush3.msra.mxu0 %v1516_v10 }
  0x1e   : > { %1644 = vmatmul.mubr.msk.f32.vlgmr.msra.gmra.mxu0 %vm180_vm2, %v179_v4  ;;  %1653 = vmatprep.subr.mxu0 %v1727_v0 }
  0x1f   : > { %1654 = vmatpush3.msk.msra.mxu0 %vm184_vm1, %v1523_v11  ;;  %1657 = vmatprep.mubr.msk.f32.mxu0 %vm1728_vm0, %v1727_v0 }
  0x20   : > { %1655 = vmatprep.subr.mxu0 %v1727_v0 }
  0x21   : > { %1656 = vmatpush3.msra.mxu0 %v1522_v12 }
  0x22   : > { %1658 = vmatmul.mubr.msk.f32.vlgmr.msra.gmra.mxu0 %vm180_vm2, %v179_v4  ;;  %1667 = vmatprep.subr.mxu0 %v1727_v0 }
  0x23   : > { %1668 = vmatpush3.msk.msra.mxu0 %vm184_vm1, %v1529_v13  ;;  %1671 = vmatprep.mubr.msk.f32.mxu0 %vm1728_vm0, %v1727_v0 }
  0x24   : > { %1669 = vmatprep.subr.mxu0 %v1727_v0 }
  0x25   : > { %1670 = vmatpush3.msra.mxu0 %v1528_v14 }
  0x26   : > { %1672 = vmatmul.mubr.msk.f32.vlgmr.msra.gmra.mxu0 %vm180_vm2, %v179_v4  ;;  %1681 = vmatprep.subr.mxu0 %v1727_v0 }
  0x27   : > { %1682 = vmatpush3.msk.msra.mxu0 %vm184_vm1, %v1535_v15  ;;  %1685 = vmatprep.mubr.msk.f32.mxu0 %vm1728_vm0, %v1727_v0 }
  0x28   : > { %1683 = vmatprep.subr.mxu0 %v1727_v0 }
  0x29   : > { %1684 = vmatpush3.msra.mxu0 %v1534_v16 }
  0x2a   : > { %1686 = vmatmul.mubr.msk.f32.vlgmr.msra.gmra.mxu0 %vm180_vm2, %v179_v4  ;;  %1695 = vmatprep.subr.mxu0 %v1727_v0 }
  0x2b   : > { %1696 = vmatpush3.msk.msra.mxu0 %vm184_vm1, %v1541_v17  ;;  %1699 = vmatprep.mubr.msk.f32.mxu0 %vm1728_vm0, %v1727_v0 }
  0x2c   : > { %1697 = vmatprep.subr.mxu0 %v1727_v0 }
  0x2d   : > { %1698 = vmatpush3.msra.mxu0 %v1540_v18 }
  0x2e   : > { %1700 = vmatmul.mubr.msk.f32.vlgmr.msra.gmra.mxu0 %vm180_vm2, %v179_v4 }
  0xd2   : > { %v254_v20 = vpop.f32.mrf.mxu0 }
  0xd3   : > { %1609 = vmatmul.mubr.msk.f32.vlgmr.msra.gmra.mxu1 %vm260_vm3, %v254_v20 }
  0xd4   : > { %v1603_v21 = vpop.f32.mrf.mxu0  ;;  %1619 = vmatpush3.msra.mxu1 %v1763_v1  ;;  %1622 = vmatprep.mubr.msk.f32.mxu1 %vm1728_vm0, %v1727_v0 }
  0xd5   : > { %1620 = vmatprep.subr.mxu1 %v1727_v0 }
  0xd6   : > { %v412_v22 = vpop.f32.mrf.mxu0  ;;  %1621 = vmatpush3.msra.mxu1 %v258_v19 }
  0xd7   : > { %1623 = vmatmul.mubr.msk.f32.vlgmr.msra.gmra.mxu1 %vm260_vm3, %v412_v22  ;;  %1632 = vmatprep.subr.mxu1 %v1727_v0 }
  0xd8   : > { %v1617_v23 = vpop.f32.mrf.mxu0  ;;  %1633 = vmatpush3.msra.mxu1 %v1763_v1  ;;  %1636 = vmatprep.mubr.msk.f32.mxu1 %vm1728_vm0, %v1727_v0 }
  0xd9   : > { %1634 = vmatprep.subr.mxu1 %v1727_v0 }
  0xda   : > { %v569_v24 = vpop.f32.mrf.mxu0  ;;  %1635 = vmatpush3.msra.mxu1 %v258_v19 }
  0xdb   : > { %1637 = vmatmul.mubr.msk.f32.vlgmr.msra.gmra.mxu1 %vm260_vm3, %v569_v24  ;;  %1646 = vmatprep.subr.mxu1 %v1727_v0 }
  0xdc   : > { %v1631_v25 = vpop.f32.mrf.mxu0  ;;  %1647 = vmatpush3.msra.mxu1 %v1763_v1  ;;  %1650 = vmatprep.mubr.msk.f32.mxu1 %vm1728_vm0, %v1727_v0 }
  0xdd   : > { %1648 = vmatprep.subr.mxu1 %v1727_v0 }
  0xde   : > { %v726_v26 = vpop.f32.mrf.mxu0  ;;  %1649 = vmatpush3.msra.mxu1 %v258_v19 }
  0xdf   : > { %1651 = vmatmul.mubr.msk.f32.vlgmr.msra.gmra.mxu1 %vm260_vm3, %v726_v26  ;;  %1660 = vmatprep.subr.mxu1 %v1727_v0 }
  0xe0   : > { %v1645_v27 = vpop.f32.mrf.mxu0  ;;  %1661 = vmatpush3.msra.mxu1 %v1763_v1  ;;  %1664 = vmatprep.mubr.msk.f32.mxu1 %vm1728_vm0, %v1727_v0 }
  0xe1   : > { %1662 = vmatprep.subr.mxu1 %v1727_v0 }
  0xe2   : > { %v883_v28 = vpop.f32.mrf.mxu0  ;;  %1663 = vmatpush3.msra.mxu1 %v258_v19 }
  0xe3   : > { %1665 = vmatmul.mubr.msk.f32.vlgmr.msra.gmra.mxu1 %vm260_vm3, %v883_v28  ;;  %1674 = vmatprep.subr.mxu1 %v1727_v0 }
  0xe4   : > { %v1659_v29 = vpop.f32.mrf.mxu0  ;;  %1675 = vmatpush3.msra.mxu1 %v1763_v1  ;;  %1678 = vmatprep.mubr.msk.f32.mxu1 %vm1728_vm0, %v1727_v0 }
  0xe5   : > { %1676 = vmatprep.subr.mxu1 %v1727_v0 }
  0xe6   : > { %v1040_v30 = vpop.f32.mrf.mxu0  ;;  %1677 = vmatpush3.msra.mxu1 %v258_v19 }
  0xe7   : > { %1679 = vmatmul.mubr.msk.f32.vlgmr.msra.gmra.mxu1 %vm260_vm3, %v1040_v30  ;;  %1688 = vmatprep.subr.mxu1 %v1727_v0 }
  0xe8   : > { %v1673_v31 = vpop.f32.mrf.mxu0  ;;  %1689 = vmatpush3.msra.mxu1 %v1763_v1  ;;  %1692 = vmatprep.mubr.msk.f32.mxu1 %vm1728_vm0, %v1727_v0 }
  0xe9   : > { %1690 = vmatprep.subr.mxu1 %v1727_v0 }
  0xea   : > { %v1197_v32 = vpop.f32.mrf.mxu0  ;;  %1691 = vmatpush3.msra.mxu1 %v258_v19 }
  0xeb   : > { %1693 = vmatmul.mubr.msk.f32.vlgmr.msra.gmra.mxu1 %vm260_vm3, %v1197_v32  ;;  %1702 = vmatprep.subr.mxu1 %v1727_v0 }
  0xec   : > { %v1687_v33 = vpop.f32.mrf.mxu0  ;;  %1703 = vmatpush3.msra.mxu1 %v1763_v1  ;;  %1706 = vmatprep.mubr.msk.f32.mxu1 %vm1728_vm0, %v1727_v0 }
  0xed   : > { %1704 = vmatprep.subr.mxu1 %v1727_v0 }
  0xee   : > { %v1354_v34 = vpop.f32.mrf.mxu0  ;;  %1705 = vmatpush3.msra.mxu1 %v258_v19 }
  0xef   : > { %1707 = vmatmul.mubr.msk.f32.vlgmr.msra.gmra.mxu1 %vm260_vm3, %v1354_v34 }
  0xf0   : > { %v1701_v35 = vpop.f32.mrf.mxu0 }
 0x193   : > { %v330_v36 = vpop.f32.mrf.mxu1 }
 0x194   : > { %335 = vst.msk [vmem:[%s175_s28] sm:$0xff] %vm334_vm4, %v330_v36 }
 0x195   : > { %v1610_v37 = vpop.f32.mrf.mxu1 }
 0x197   : > { %v487_v38 = vpop.f32.mrf.mxu1 }
 0x198   : > { %1509 = vst.msk [vmem:[%s175_s28 + $0x8] sm:$0xff] %vm334_vm4, %v487_v38 }
 0x199   : > { %v1624_v39 = vpop.f32.mrf.mxu1 }
 0x19b   : > { %v644_v40 = vpop.f32.mrf.mxu1 }
 0x19c   : > { %1515 = vst.msk [vmem:[%s175_s28 + $0x10] sm:$0xff] %vm334_vm4, %v644_v40 }
 0x19d   : > { %v1638_v41 = vpop.f32.mrf.mxu1 }
 0x19f   : > { %v801_v42 = vpop.f32.mrf.mxu1 }
 0x1a0   : > { %1521 = vst.msk [vmem:[%s175_s28 + $0x18] sm:$0xff] %vm334_vm4, %v801_v42 }
 0x1a1   : > { %v1652_v43 = vpop.f32.mrf.mxu1 }
 0x1a3   : > { %v958_v44 = vpop.f32.mrf.mxu1 }
 0x1a4   : > { %1527 = vst.msk [vmem:[%s175_s28 + $0x20] sm:$0xff] %vm334_vm4, %v958_v44 }
 0x1a5   : > { %v1666_v45 = vpop.f32.mrf.mxu1 }
 0x1a7   : > { %v1115_v46 = vpop.f32.mrf.mxu1 }
 0x1a8   : > { %1533 = vst.msk [vmem:[%s175_s28 + $0x28] sm:$0xff] %vm334_vm4, %v1115_v46 }
 0x1a9   : > { %v1680_v47 = vpop.f32.mrf.mxu1 }
 0x1ab   : > { %v1272_v48 = vpop.f32.mrf.mxu1 }
 0x1ac   : > { %1539 = vst.msk [vmem:[%s175_s28 + $0x30] sm:$0xff] %vm334_vm4, %v1272_v48 }
 0x1ad   : > { %v1694_v49 = vpop.f32.mrf.mxu1 }
 0x1af   : > { %v1429_v50 = vpop.f32.mrf.mxu1 }
 0x1b0   : > { %1545 = vst.msk [vmem:[%s175_s28 + $0x38] sm:$0xff] %vm334_vm4, %v1429_v50 }
 0x1b1   : > { %v1708_v51 = vpop.f32.mrf.mxu1 }
 0x1b2 PF: > { %s13_s12 = sadd.s32 1, %s1725_s12  }
 0x1b3   : > { %p10_p4 = scmp.ge.s32.totalorder %s13_s12, 6  }
 0x1b5   :  { %12 = sbr.rel (!%p10_p4) target bundleno = 1 (0x1), region = 76 }

</bundles_post_ra>
